<compile_context>
chip_gen: v7x
topology: tpu7x:2x2x1
jax: 0.10.0
libtpu: 0.0.40
codegen_flags: <defaults>
</compile_context>

<pallas_src>
import functools

import jax
import jax.numpy as jnp
from jax import lax
from jax.experimental import pallas as pl
from jax.experimental.pallas import tpu as pltpu

_MASK_VALUE = -1e30  # large finite negative (avoids -inf - -inf NaN traps)


# ---------------------------------------------------------------------------
# Pass 1: fused QKV projection — one lane-dense tiled matmul.
# ---------------------------------------------------------------------------
def _matmul_kernel(a_ref, b_ref, o_ref, acc_ref):
    @pl.when(pl.program_id(2) == 0)
    def _():
        acc_ref[...] = jnp.zeros_like(acc_ref)

    acc_ref[...] += jnp.dot(a_ref[...], b_ref[...],
                            preferred_element_type=jnp.float32)

    @pl.when(pl.program_id(2) == pl.num_programs(2) - 1)
    def _():
        o_ref[...] = acc_ref[...].astype(o_ref.dtype)


def _project(a, b, out_dtype, *, tm=256, tn=256, tk=256):
    """a: (M, K), b: (K, N) -> (M, N) in out_dtype (f32 accumulation on MXU)."""
    M, K = a.shape
    _, N = b.shape
    tm, tn, tk = min(tm, M), min(tn, N), min(tk, K)
    assert M % tm == 0 and N % tn == 0 and K % tk == 0, "projection tile mismatch"
    return pl.pallas_call(
        _matmul_kernel,
        out_shape=jax.ShapeDtypeStruct((M, N), out_dtype),
        grid_spec=pltpu.PrefetchScalarGridSpec(
            num_scalar_prefetch=0,
            grid=(M // tm, N // tn, K // tk),
            in_specs=[pl.BlockSpec((tm, tk), lambda i, j, k: (i, k)),
                      pl.BlockSpec((tk, tn), lambda i, j, k: (k, j))],
            out_specs=pl.BlockSpec((tm, tn), lambda i, j, k: (i, j)),
            scratch_shapes=[pltpu.VMEM((tm, tn), jnp.float32)],
        ),
        compiler_params=pltpu.CompilerParams(
            dimension_semantics=("parallel", "parallel", "arbitrary")),
    )(a, b)


# ---------------------------------------------------------------------------
# Pass 2: flash attention over a triangular (qi, h, kv) schedule, with the
# output projection fused per head into a lane-dense (tq, D_out) accumulator.
# ---------------------------------------------------------------------------
def _flash_mha_kernel(qi_tbl, h_tbl, kv_tbl,            # scalar-prefetch (SMEM)
                      q_ref, k_ref, v_ref, wo_ref, bo_ref,
                      o_ref,
                      m_scr, l_scr, acc_scr, out_acc,
                      *, approx_recip):
    """Grid = (batch, flat) where flat enumerates (qi, h, kv) with kv <= kv_last(qi).

    q_ref : (tq, hd)   pre-scaled query tile (head/batch dims squeezed)
    k_ref : (tkv, hd)  key tile
    v_ref : (tkv, hd)  value tile
    wo_ref: (H, hd, D_out)  VMEM-resident per-head output projection
    bo_ref: (1, D_out)
    o_ref : (tq, D_out)     resident across the h/kv portion of the flat axis
    """
    p = pl.program_id(1)
    qi = qi_tbl[p]
    h = h_tbl[p]
    kv = kv_tbl[p]

    tq, hd = q_ref.shape
    tkv = k_ref.shape[0]
    nh = wo_ref.shape[0]
    cdt = q_ref.dtype

    q_start = qi * tq
    k_start = kv * tkv
    kv_last = (q_start + tq - 1) // tkv          # last KV tile touching this q tile

    is_first_kv = kv == 0
    is_last_kv = kv == kv_last

    # --- (b, qi) prologue: zero the cross-head output-projection accumulator.
    @pl.when(jnp.logical_and(h == 0, is_first_kv))
    def _():
        out_acc[...] = jnp.zeros_like(out_acc)

    # --- (b, qi, h) prologue: reset flash state.
    @pl.when(is_first_kv)
    def _():
        m_scr[...] = jnp.full_like(m_scr, -jnp.inf)
        l_scr[...] = jnp.zeros_like(l_scr)
        acc_scr[...] = jnp.zeros_like(acc_scr)

    q = q_ref[...]            # already scaled by 1/sqrt(hd), already compute dtype
    k = k_ref[...]
    v = v_ref[...]

    def scores():
        # Q @ K^T without an explicit transpose: contract last dims.
        return lax.dot_general(q, k,
                               dimension_numbers=(((1,), (1,)), ((), ())),
                               preferred_element_type=jnp.float32)   # (tq, tkv)

    def flash_update(s):
        m_prev = m_scr[...]
        m_new = jnp.maximum(m_prev, jnp.max(s, axis=-1, keepdims=True))
        alpha = jnp.exp(m_prev - m_new)
        pr = jnp.exp(s - m_new)
        l_scr[...] = alpha * l_scr[...] + jnp.sum(pr, axis=-1, keepdims=True)
        acc_scr[...] = alpha * acc_scr[...] + jnp.dot(
            pr.astype(cdt), v, preferred_element_type=jnp.float32)
        m_scr[...] = m_new

    # Only tiles straddling the causal diagonal build/apply the mask;
    # interior tiles take the unmasked fast path (saves ~3-4 (tq,tkv) VPU passes).
    needs_mask = (k_start + tkv) > (q_start + 1)

    @pl.when(needs_mask)
    def _():
        s = scores()
        row = q_start + lax.broadcasted_iota(jnp.int32, (tq, tkv), 0)
        col = k_start + lax.broadcasted_iota(jnp.int32, (tq, tkv), 1)
        flash_update(jnp.where(col > row, _MASK_VALUE, s))

    @pl.when(jnp.logical_not(needs_mask))
    def _():
        flash_update(scores())

    # --- (b, qi, h) epilogue: normalize and fold this head into the out-projection.
    @pl.when(is_last_kv)
    def _():
        inv_l = pl.reciprocal(l_scr[...], approx=approx_recip)
        ctx = (acc_scr[...] * inv_l).astype(cdt)                     # (tq, hd)
        out_acc[...] += jnp.dot(ctx, wo_ref[h],
                                preferred_element_type=jnp.float32)

    # --- (b, qi) epilogue: add bias, write the lane-dense output tile.
    @pl.when(jnp.logical_and(h == nh - 1, is_last_kv))
    def _():
        o_ref[...] = (out_acc[...] + bo_ref[0].astype(jnp.float32)).astype(o_ref.dtype)


def multi_head_attention(x, wq_t, wk_t, wv_t, wo_t, bo, *, num_heads,
                         tq=None, tkv=None, compute_dtype=None,
                         approx_reciprocal=None,
                         vmem_limit_bytes=32 * 1024 * 1024):
    """x: (B, T, D_in); w*_t: (in, out) transposed Linear weights; bo: (D_out,).

    compute_dtype: dtype of MXU operands (accumulation is always f32).
        Use jnp.bfloat16 on v5e/v6e/v7x for ~2x MXU throughput + half the DMA.
    tq/tkv: flash tile sizes. 128 default works everywhere (v5e MXU = 128x128);
        use 256 on v6e/v7x to fill the 256-wide MXU (re-check VMEM on v7x, 64 MiB).
    approx_reciprocal: use the EUP approximate reciprocal for the softmax denom
        (default: only on the bf16 path).
    """
    B, T, D_in = x.shape
    D_out = wq_t.shape[1]
    assert D_out % num_heads == 0
    H = num_heads
    hd = D_out // H

    cdt = x.dtype if compute_dtype is None else compute_dtype
    tq = min(T, 128) if tq is None else tq
    tkv = min(T, 128) if tkv is None else tkv
    assert T % tq == 0 and T % tkv == 0, "T must be divisible by tile sizes"
    nq, nkv = T // tq, T // tkv

    # ---- pass 1: fused QKV projection, done once (1/sqrt(hd) folded into Wq) ----
    scale = 1.0 / (hd ** 0.5)
    w_qkv = jnp.concatenate([wq_t * scale, wk_t, wv_t], axis=1).astype(cdt)
    xs = x.astype(cdt).reshape(B * T, D_in)
    qkv = _project(xs, w_qkv, cdt)                                   # (B*T, 3*D_out)

    # Layout plumbing (XLA, once per forward): -> 3 x (B, H, T, hd) in compute dtype.
    qkv = qkv.reshape(B, T, 3, H, hd).transpose(2, 0, 3, 1, 4)
    q, k, v = qkv[0], qkv[1], qkv[2]

    # Resident output-projection weights / bias.
    wo_h = wo_t.reshape(H, hd, D_out).astype(cdt)                    # (H, hd, D_out)
    bo2 = bo.reshape(1, D_out).astype(jnp.float32)

    # ---- triangular schedule tables: fully-future KV tiles are never scheduled ----
    qi_l, h_l, kv_l = [], [], []
    for qi in range(nq):
        kv_last = min(nkv - 1, (qi * tq + tq - 1) // tkv)
        for h in range(H):
            for kv in range(kv_last + 1):
                qi_l.append(qi)
                h_l.append(h)
                kv_l.append(kv)
    qi_tbl = jnp.asarray(qi_l, dtype=jnp.int32)
    h_tbl = jnp.asarray(h_l, dtype=jnp.int32)
    kv_tbl = jnp.asarray(kv_l, dtype=jnp.int32)
    n_steps = len(qi_l)

    approx = (cdt == jnp.bfloat16) if approx_reciprocal is None else approx_reciprocal
    kernel = functools.partial(_flash_mha_kernel, approx_recip=bool(approx))

    return pl.pallas_call(
        kernel,
        out_shape=jax.ShapeDtypeStruct((B, T, D_out), x.dtype),
        grid_spec=pltpu.PrefetchScalarGridSpec(
            num_scalar_prefetch=3,
            grid=(B, n_steps),
            in_specs=[
                # Q tile: constant across the kv sub-loop -> fetched once per (b, qi, h).
                pl.BlockSpec((None, None, tq, hd),
                             lambda b, p, qi_t, h_t, kv_t: (b, h_t[p], qi_t[p], 0)),
                # K / V tiles (the only per-step streamed operands).
                pl.BlockSpec((None, None, tkv, hd),
                             lambda b, p, qi_t, h_t, kv_t: (b, h_t[p], kv_t[p], 0)),
                pl.BlockSpec((None, None, tkv, hd),
                             lambda b, p, qi_t, h_t, kv_t: (b, h_t[p], kv_t[p], 0)),
                # VMEM-resident output projection weights + bias (constant index map).
                pl.BlockSpec((H, hd, D_out),
                             lambda b, p, qi_t, h_t, kv_t: (0, 0, 0)),
                pl.BlockSpec((1, D_out),
                             lambda b, p, qi_t, h_t, kv_t: (0, 0)),
            ],
            out_specs=pl.BlockSpec((None, tq, D_out),
                                   lambda b, p, qi_t, h_t, kv_t: (b, qi_t[p], 0)),
            scratch_shapes=[
                pltpu.VMEM((tq, 1), jnp.float32),      # running max m
                pltpu.VMEM((tq, 1), jnp.float32),      # running denom l
                pltpu.VMEM((tq, hd), jnp.float32),     # running P@V accumulator
                pltpu.VMEM((tq, D_out), jnp.float32),  # cross-head out-proj accumulator
            ],
        ),
        compiler_params=pltpu.CompilerParams(
            dimension_semantics=("parallel", "arbitrary"),
            vmem_limit_bytes=vmem_limit_bytes,
        ),
    )(qi_tbl, h_tbl, kv_tbl, q, k, v, wo_h, bo2)


# ---------------------------------------------------------------------------
# Pure-JAX reference mirroring the PyTorch forward (dropout in eval mode).
# ---------------------------------------------------------------------------
def reference_mha(x, wq_t, wk_t, wv_t, wo_t, bo, *, num_heads):
    B, T, _ = x.shape
    D_out = wq_t.shape[1]
    hd = D_out // num_heads
    q = (x @ wq_t).reshape(B, T, num_heads, hd).transpose(0, 2, 1, 3)
    k = (x @ wk_t).reshape(B, T, num_heads, hd).transpose(0, 2, 1, 3)
    v = (x @ wv_t).reshape(B, T, num_heads, hd).transpose(0, 2, 1, 3)
    scores = jnp.einsum("bhqd,bhkd->bhqk", q, k) / (hd ** 0.5)
    mask = jnp.triu(jnp.ones((T, T), dtype=bool), k=1)
    scores = jnp.where(mask, -jnp.inf, scores)
    w = jax.nn.softmax(scores, axis=-1)
    ctx = jnp.einsum("bhqk,bhkd->bhqd", w, v)
    ctx = ctx.transpose(0, 2, 1, 3).reshape(B, T, D_out)
    return ctx @ wo_t + bo


if __name__ == "__main__":
    B = 2
    D_IN, D_OUT, NUM_HEADS = 32, 32, 4

    key = jax.random.PRNGKey(0)
    kx, kq, kk, kv_, ko, kb = jax.random.split(key, 6)

    wq_t = jax.random.normal(kq, (D_IN, D_OUT), dtype=jnp.float32) * 0.05
    wk_t = jax.random.normal(kk, (D_IN, D_OUT), dtype=jnp.float32) * 0.05
    wv_t = jax.random.normal(kv_, (D_IN, D_OUT), dtype=jnp.float32) * 0.05
    wo_t = jax.random.normal(ko, (D_OUT, D_OUT), dtype=jnp.float32) * 0.05
    bo = jax.random.normal(kb, (D_OUT,), dtype=jnp.float32) * 0.05

    # --- test 1: single q/kv tile (T == tq == tkv) ---
    T1 = 8
    x1 = jax.random.normal(kx, (B, T1, D_IN), dtype=jnp.float32)
    out1 = multi_head_attention(x1, wq_t, wk_t, wv_t, wo_t, bo, num_heads=NUM_HEADS)
    out1 = jax.block_until_ready(out1)
    ref1 = reference_mha(x1, wq_t, wk_t, wv_t, wo_t, bo, num_heads=NUM_HEADS)
    assert out1.shape == (B, T1, D_OUT)
    assert jnp.allclose(out1, ref1, atol=1e-3, rtol=1e-3), "mismatch (single tile)"

    # --- test 2: multi-tile triangular grid (online softmax + diagonal masking) ---
    T2 = 32
    x2 = jax.random.normal(kx, (B, T2, D_IN), dtype=jnp.float32)
    out2 = multi_head_attention(x2, wq_t, wk_t, wv_t, wo_t, bo,
                                num_heads=NUM_HEADS, tq=8, tkv=8)
    out2 = jax.block_until_ready(out2)
    ref2 = reference_mha(x2, wq_t, wk_t, wv_t, wo_t, bo, num_heads=NUM_HEADS)
    assert out2.shape == (B, T2, D_OUT)
    assert jnp.allclose(out2, ref2, atol=1e-3, rtol=1e-3), "mismatch (multi tile)"

    # --- test 3: unequal tiles (tq > tkv exercises fully-masked rows path) ---
    out3 = multi_head_attention(x2, wq_t, wk_t, wv_t, wo_t, bo,
                                num_heads=NUM_HEADS, tq=16, tkv=8)
    out3 = jax.block_until_ready(out3)
    assert jnp.allclose(out3, ref2, atol=1e-3, rtol=1e-3), "mismatch (unequal tiles)"

    # --- test 4: bf16 MXU operands / f32 accumulation (v5e/v6e/v7x fast path) ---
    out4 = multi_head_attention(x2, wq_t, wk_t, wv_t, wo_t, bo,
                                num_heads=NUM_HEADS, tq=8, tkv=8,
                                compute_dtype=jnp.bfloat16)
    out4 = jax.block_until_ready(out4)
    assert jnp.allclose(out4, ref2, atol=3e-2, rtol=3e-2), "mismatch (bf16 path)"

    print("KERNEL_OK")
</pallas_src>

<mosaic_0001>
module attributes {stable_mosaic.version = 11 : i64} {
  func.func @_matmul_kernel(%arg0: i32, %arg1: i32, %arg2: i32, %arg3: memref<16x32xf32, #tpu.memory_space<vmem>>, %arg4: memref<32x96xf32, #tpu.memory_space<vmem>>, %arg5: memref<16x96xf32, #tpu.memory_space<vmem>>, %arg6: memref<16x96xf32, #tpu.memory_space<vmem>>) attributes {dimension_semantics = [#tpu.dimension_semantics<parallel>, #tpu.dimension_semantics<parallel>, #tpu.dimension_semantics<arbitrary>], iteration_bounds = array<i64: 1, 1, 1>, scalar_prefetch = 0 : i64, scratch_operands = 1 : i64, tpu.core_type = #tpu.core_type<tc>, window_params = [{transform_indices = @transform_0, window_bounds = array<i64: 16, 32>}, {transform_indices = @transform_1, window_bounds = array<i64: 32, 96>}, {transform_indices = @transform_2, window_bounds = array<i64: 16, 96>}]} {
    %c0_i32 = arith.constant 0 : i32
    %0 = arith.cmpi eq, %arg2, %c0_i32 : i32
    %1 = arith.extui %0 : i1 to i32
    %c0_i32_0 = arith.constant 0 : i32
    %2 = arith.cmpi ne, %1, %c0_i32_0 : i32
    scf.if %2 {
      %cst_10 = arith.constant 0.000000e+00 : f32
      %12 = vector.broadcast %cst_10 : f32 to vector<16x96xf32>
      %c0_11 = arith.constant 0 : index
      %c0_12 = arith.constant 0 : index
      %13 = vector.load %arg6[%c0_11, %c0_12] : memref<16x96xf32, #tpu.memory_space<vmem>>, vector<16x96xf32>
      tpu.vector_store %arg6[%c0_11, %c0_12], %12 {strides = array<i32>} : memref<16x96xf32, #tpu.memory_space<vmem>>, vector<16x96xf32>,
    } else {
    }
    %c0 = arith.constant 0 : index
    %c0_1 = arith.constant 0 : index
    %3 = vector.load %arg6[%c0, %c0_1] : memref<16x96xf32, #tpu.memory_space<vmem>>, vector<16x96xf32>
    %c0_2 = arith.constant 0 : index
    %c0_3 = arith.constant 0 : index
    %4 = vector.load %arg3[%c0_2, %c0_3] : memref<16x32xf32, #tpu.memory_space<vmem>>, vector<16x32xf32>
    %c0_4 = arith.constant 0 : index
    %c0_5 = arith.constant 0 : index
    %5 = vector.load %arg4[%c0_4, %c0_5] : memref<32x96xf32, #tpu.memory_space<vmem>>, vector<32x96xf32>
    %cst = arith.constant dense<0.000000e+00> : vector<16x96xf32>
    %6 = tpu.matmul %4, %5, %cst {dimension_numbers = #tpu.dot_dimension_numbers<[1], [0], [0], [1], [0, 0, 1, 1], [], []>} : vector<16x32xf32>, vector<32x96xf32>, vector<16x96xf32> -> vector<16x96xf32>
    %7 = arith.addf %3, %6 : vector<16x96xf32>
    %c0_6 = arith.constant 0 : index
    %c0_7 = arith.constant 0 : index
    %8 = vector.load %arg6[%c0_6, %c0_7] : memref<16x96xf32, #tpu.memory_space<vmem>>, vector<16x96xf32>
    tpu.vector_store %arg6[%c0_6, %c0_7], %7 {strides = array<i32>} : memref<16x96xf32, #tpu.memory_space<vmem>>, vector<16x96xf32>,
    %c0_i32_8 = arith.constant 0 : i32
    %9 = arith.cmpi eq, %arg2, %c0_i32_8 : i32
    %10 = arith.extui %9 : i1 to i32
    %c0_i32_9 = arith.constant 0 : i32
    %11 = arith.cmpi ne, %10, %c0_i32_9 : i32
    scf.if %11 {
      %c0_10 = arith.constant 0 : index
      %c0_11 = arith.constant 0 : index
      %12 = vector.load %arg6[%c0_10, %c0_11] : memref<16x96xf32, #tpu.memory_space<vmem>>, vector<16x96xf32>
      %c0_12 = arith.constant 0 : index
      %c0_13 = arith.constant 0 : index
      %13 = vector.load %arg5[%c0_12, %c0_13] : memref<16x96xf32, #tpu.memory_space<vmem>>, vector<16x96xf32>
      tpu.vector_store %arg5[%c0_12, %c0_13], %12 {strides = array<i32>} : memref<16x96xf32, #tpu.memory_space<vmem>>, vector<16x96xf32>,
    } else {
    }
    return
  }
  func.func @transform_0(%arg0: i32, %arg1: i32, %arg2: i32) -> (i32, i32) {
    %c0_i32 = arith.constant 0 : i32
    return %arg0, %arg2 : i32, i32
  }
  func.func @transform_1(%arg0: i32, %arg1: i32, %arg2: i32) -> (i32, i32) {
    %c0_i32 = arith.constant 0 : i32
    return %arg2, %arg1 : i32, i32
  }
  func.func @transform_2(%arg0: i32, %arg1: i32, %arg2: i32) -> (i32, i32) {
    %c0_i32 = arith.constant 0 : i32
    return %arg0, %arg1 : i32, i32
  }
}

</mosaic_0001>

<bundles_post_ra>
// kernel: tpu_custom_call.1
= control target key start
LH: loop header
LB: loop body
LE: loop exit
PB: predicated region body
PF: predicated region fallthrough
CT: control target
= control target key end

     0   :  { %7 = vsyncpa [#allocation4], 0  ;;  %s344_s0 = inlined_call_operand.hbm [shape: f32[16,32], index: 0, kind: input, shape index: {}]   ;;  %s345_s1 = inlined_call_operand.hbm [shape: f32[32,96], index: 1, kind: input, shape index: {}]   ;;  %s346_s2 = inlined_call_operand.hbm [shape: f32[16,96], index: 2, kind: output, shape index: {}]  }
   0x1   :  { %8 = vsyncpa [#allocation7], 0 }
   0x2   :  { %9 = vsyncpa [#allocation5], 0  ;;  %s272_s9 = smov [#allocation3]   ;;  %s200_s13 = scalar_lea.hbm %s344_s0, 256 }
   0x3   :  { %s15_s10 = sshll.u32 %s272_s9, 4  ;;  %p201_p0 = scmp.ne.s32.totalorder %s344_s0, %s200_s13  ;;  %s16_s10 = int_to_ptr.vmem [resolvable:$true] %s15_s10 }
   0x4   :  { %p204_p1 = scmp.lt.u32.totalorder %s200_s13, %s344_s0 }
   0x6   :  { %p206_p2 = pnand %p204_p1, %p201_p0 }
   0x8   :  { %209 = shalt.err (!%p206_p2)
}
   0x9   :  { %s210_s18 = scalar_lea.vmem %s16_s10, 256  ;;  %p215_p4 = scmp.lt.s32.totalorder %s16_s10, %s16_s10 }
   0xa   :  { %p211_p3 = scmp.ne.s32.totalorder %s16_s10, %s210_s18  ;;  %p216_p5 = scmp.lt.s32.totalorder %s210_s18, %s210_s18 }
   0xc   :  { %p217_p6 = por %p216_p5, %p215_p4 }
   0xe   :  { %p218_p7 = pnand %p217_p6, %p211_p3 }
  0x10   :  { %221 = shalt.err (!%p218_p7)
}
  0x11   :  { %s273_s19 = smov 128   ;;  %s274_s20 = smov 8  }
  0x12   :  { %21 = dma.hbm_to_vmem [thread:$0]  %s344_s0, 256, %s16_s10, [#allocation4], %s273_s19, %s273_s19, %s274_s20  }
  0x13   :  { %s275_s23 = smov [#allocation6]   ;;  %s222_s27 = scalar_lea.hbm %s345_s1, 512 }
  0x14   :  { %s27_s24 = sshll.u32 %s275_s23, 4  ;;  %p223_p8 = scmp.ne.s32.totalorder %s345_s1, %s222_s27  ;;  %s28_s24 = int_to_ptr.vmem [resolvable:$true] %s27_s24 }
  0x15   :  { %p226_p9 = scmp.lt.u32.totalorder %s222_s27, %s345_s1 }
  0x17   :  { %p228_p10 = pnand %p226_p9, %p223_p8 }
  0x19   :  { %231 = shalt.err (!%p228_p10)
}
  0x1a   :  { %s232_s4 = scalar_lea.vmem %s28_s24, 512  ;;  %p237_p12 = scmp.lt.s32.totalorder %s28_s24, %s28_s24 }
  0x1b   :  { %p233_p11 = scmp.ne.s32.totalorder %s28_s24, %s232_s4  ;;  %p238_p13 = scmp.lt.s32.totalorder %s232_s4, %s232_s4 }
  0x1d   :  { %p239_p0 = por %p238_p13, %p237_p12 }
  0x1f   :  { %p240_p1 = pnand %p239_p0, %p233_p11 }
  0x21   :  { %243 = shalt.err (!%p240_p1)
}
  0x22   :  { %33 = dma.hbm_to_vmem [thread:$0]  %s345_s1, 512, %s28_s24, [#allocation7], %s273_s19, %s273_s19, %s274_s20  }
  0x23   :  { %266 = dma.done.wait [#allocation4], 256  }
  0x24   :  { %267 = vsyncadd [#allocation4], 4294967040 }
  0x25   :  { %268 = dma.done.wait [#allocation7], 512  }
  0x26   :  { %269 = vsyncadd [#allocation7], 4294966784  ;;  %vm44_vm0 = vcmask 785408   ;;  %v276_v0 = vmov 0.0   ;;  %vm55_vm1 = vcmask 261120   ;;  %v51_v1 = vld [vmem:[#allocation6] sm:$0xff] }
  0x27   :  { %46 = vst.msk [vmem:[#allocation2 + $0x8] sm:$0xff] %vm44_vm0, %v276_v0  ;;  %45 = vst.msk [vmem:[#allocation2] sm:$0xff] %vm44_vm0, %v276_v0  ;;  %v52_v2 = vld [vmem:[#allocation6 + $0x8] sm:$0xff]  ;;  %v53_v3 = vld [vmem:[#allocation6 + $0x10] sm:$0xff]  ;;  %s277_s1 = smov [#allocation8]  }
  0x28   :  { %v186_v4 = vpack.c.bf16 %v52_v2, %v51_v1  ;;  %v54_v5 = vld [vmem:[#allocation6 + $0x18] sm:$0xff]  ;;  %v49_v6 = vld [vmem:[#allocation3] sm:$0xff]  ;;  %s154_s6 = sshll.u32 %s277_s1, 4  ;;  %s155_s6 = int_to_ptr.vmem [resolvable:$true] %s154_s6 }
  0x29   :  { %v190_v7 = vpack.c.bf16 %v54_v5, %v53_v3  ;;  %183 = vmatprep.mubr.msk.f32.mxu0 %vm55_vm1, %v49_v6  ;;  %v50_v8 = vld [vmem:[#allocation3 + $0x8] sm:$0xff]  ;;  %s244_s7 = scalar_lea.vmem %s155_s6, 256  ;;  %p249_p3 = scmp.lt.s32.totalorder %s155_s6, %s155_s6 }
  0x2a   :  { %187 = vmatprep.subr.bf16.mxu0 %v186_v4  ;;  %p245_p2 = scmp.ne.s32.totalorder %s155_s6, %s244_s7  ;;  %p250_p4 = scmp.lt.s32.totalorder %s244_s7, %s244_s7 }
  0x2b   :  { %189 = vmatpush3.bf16.msra.mxu0 %v186_v4 }
  0x2c   :  { %191 = vmatprep.subr.bf16.mxu0 %v190_v7  ;;  %p251_p5 = por %p250_p4, %p249_p3 }
  0x2e   :  { %v48_v9 = vld [vmem:[#allocation2 + $0x8] sm:$0xff]  ;;  %v47_v10 = vld [vmem:[#allocation2] sm:$0xff]  ;;  %p252_p6 = pnand %p251_p5, %p245_p2 }
  0x2f   :  { %193 = vmatpush3.bf16.msra.mxu0 %v190_v7 }
  0x32   :  { %184 = vmatmul.mubr.msk.f32.vlgmr.msra.gmra.mrb[0].mxu0 %vm55_vm1, %v50_v8 }
 0x105   :  { %v185_v11 = vpop.f32.mrb[0].mxu0 }
 0x106   :  { %v138_v12 = vadd.f32 %v185_v11, %v48_v9  ;;  %v128_v13 = vpop.f32.mrb[1].mxu0 }
 0x107   :  { %v137_v14 = vadd.f32 %v128_v13, %v47_v10 }
 0x108   :  { %141 = vst.msk [vmem:[#allocation2 + $0x8] sm:$0xff] %vm44_vm0, %v138_v12 }
 0x109   :  { %140 = vst.msk [vmem:[#allocation2] sm:$0xff] %vm44_vm0, %v137_v14 }
 0x10f   :  { %v146_v15 = vld [vmem:[#allocation2 + $0x8] sm:$0xff] }
 0x110   :  { %v145_v16 = vld [vmem:[#allocation2] sm:$0xff]  ;;  %148 = vst.msk [vmem:[#allocation8 + $0x8] sm:$0xff] %vm44_vm0, %v146_v15 }
 0x111   :  { %147 = vst.msk [vmem:[#allocation8] sm:$0xff] %vm44_vm0, %v145_v16 }
 0x112   :  { %255 = shalt.err (!%p252_p6)
}
 0x113   :  { %s256_s10 = scalar_lea.hbm %s346_s2, 256 }
 0x114   :  { %p257_p7 = scmp.ne.s32.totalorder %s346_s2, %s256_s10  ;;  %p260_p8 = scmp.lt.u32.totalorder %s256_s10, %s346_s2 }
 0x116   :  { %p262_p9 = pnand %p260_p8, %p257_p7 }
 0x118   :  { %265 = shalt.err (!%p262_p9)
}
 0x119   :  { %160 = dma.vmem_to_hbm [thread:$0]  %s155_s6, 256, %s346_s2, [#allocation5], %s273_s19, %s273_s19, %s274_s20  }
 0x11a   :  { %270 = dma.done.wait [#allocation5], 256  }
 0x11b   :  { %271 = vsyncadd [#allocation5], 4294967040 }
 0x11c   :  { %164 = vsyncpa [#allocation4], 1 }
 0x11d   :  { %165 = vsyncpa [#allocation7], 1 }
 0x11e   :  { %166 = vsyncpa [#allocation5], 1 }

</bundles_post_ra>
